<compile_context>
chip_gen: v7x
topology: tpu7x:2x2x1
jax: 0.10.0
libtpu: 0.0.40
codegen_flags: <defaults>
</compile_context>

<pallas_src>
import jax
import jax.numpy as jnp
from jax import lax
from jax.experimental import pallas as pl
from jax.experimental.pallas import tpu as pltpu


def _round_up(x, m):
    return ((x + m - 1) // m) * m


def _cosine_score_kernel(q_ref, it_ref, o_ref):
    # q_ref : (TM, D)  bf16 query tile (raw user embeddings)
    # it_ref: (D, TN)  bf16 pre-normalized, pre-transposed item tile (lane-dense)
    # o_ref : (TM, TN) bf16 relation scores for this (query tile, item tile)
    q = q_ref[...].astype(jnp.float32)
    ssq = jnp.sum(q * q, axis=-1, keepdims=True)
    # F.normalize(x, dim=-1): x / max(||x||, 1e-12)  ==  x * rsqrt(max(||x||^2, 1e-24))
    # The *10 relation-score scale is folded into the (TM, D) query tile instead of
    # the (TM, TN) score tile (tm*D mul instead of tm*tn mul per step).
    qhat = (q * (10.0 * lax.rsqrt(jnp.maximum(ssq, 1e-24)))).astype(jnp.bfloat16)
    # (TM, D) @ (D, TN) on the MXU, f32 accumulation, bf16 store.
    scores = lax.dot_general(qhat, it_ref[...], (((1,), (0,)), ((), ())),
                             preferred_element_type=jnp.float32)
    o_ref[...] = scores.astype(o_ref.dtype)


def prenormalize_items(item_emb):
    """One-time item-table prep: L2-normalize rows, transpose to (D, N), cast bf16.

    In deployment this is computed once per item-table update and reused across
    forward calls; it is a single tiny fused XLA op (N*D in, N*D out) next to the
    dominant M*N score output.
    """
    it = item_emb.astype(jnp.float32)
    ssq = jnp.sum(it * it, axis=-1, keepdims=True)
    it_hat = it * lax.rsqrt(jnp.maximum(ssq, 1e-24))
    return it_hat.T.astype(jnp.bfloat16)            # (D, N): lane-dense item columns


def cosine_relation_scores(query_vecs, item_t_normed, *, tm_max=512, tn_max=2048,
                           out_dtype=jnp.bfloat16):
    """10 * cos_sim(query_vecs, items) of shape (M, N) via a single Pallas matmul."""
    M, D = query_vecs.shape
    D2, N = item_t_normed.shape
    assert D == D2, "user/item embedding dims must match for the cosine matmul"

    # Largest lane/sublane-aligned tiles the problem allows; Pallas clips edge
    # blocks, so no wrapper-side padding or output re-slicing is needed.
    tm = min(tm_max, _round_up(M, 8))
    tn = min(tn_max, _round_up(N, 128))
    gm = pl.cdiv(M, tm)
    gn = pl.cdiv(N, tn)

    q = query_vecs.astype(jnp.bfloat16)

    # Double-buffered bf16 tiles + margin; cap at the chip's physical per-core VMEM.
    tile_bytes = 2 * 2 * (tm * D + D * tn + tm * tn)
    try:
        phys_vmem = pltpu.get_tpu_info().vmem_capacity_bytes
    except Exception:
        phys_vmem = 64 * 1024 * 1024                # v7x per-core VMEM (smallest)
    vmem_limit = int(min(phys_vmem - 8 * 1024 * 1024, tile_bytes + 4 * 1024 * 1024))

    out_bytes = jnp.dtype(out_dtype).itemsize
    cost = pl.CostEstimate(
        flops=2 * M * N * D + 3 * M * D * gn,
        transcendentals=M * gn,
        # item table read once (outer axis), query tiles re-read per item tile,
        # plus the dominant M*N output write.
        bytes_accessed=N * D * 2 + M * D * 2 * gn + M * N * out_bytes,
    )

    # Grid = (item tiles, query tiles): the query axis is innermost, so the item
    # block index only changes on the outer axis -> each item tile is DMA'd from HBM
    # exactly once; the (tiny) query tiles are the ones re-fetched.
    out = pl.pallas_call(
        _cosine_score_kernel,
        out_shape=jax.ShapeDtypeStruct((M, N), out_dtype),
        grid_spec=pltpu.PrefetchScalarGridSpec(
            num_scalar_prefetch=0,
            grid=(gn, gm),
            in_specs=[
                pl.BlockSpec((tm, D), lambda j, i: (i, 0)),   # query tile i
                pl.BlockSpec((D, tn), lambda j, i: (0, j)),   # item tile j (lane-dense)
            ],
            out_specs=pl.BlockSpec((tm, tn), lambda j, i: (i, j)),
        ),
        compiler_params=pltpu.CompilerParams(
            # No carries -> both axes can shard across TensorCores (v7x megacore).
            dimension_semantics=("parallel", "parallel"),
            vmem_limit_bytes=vmem_limit,
        ),
        cost_estimate=cost,
    )(q, item_t_normed)
    return out


def xavier_uniform(key, shape):
    # PyTorch xavier_uniform_ on an Embedding weight (num_emb, dim).
    fan_out, fan_in = shape
    bound = (6.0 / (fan_in + fan_out)) ** 0.5
    return jax.random.uniform(key, shape, jnp.float32, -bound, bound)


def proto_net_base_forward(user_emb, item_emb, support_indices, query_indices,
                           item_idx, embed_dim):
    """ProtoNetItemUserLL.base_forward, base_model='bpr', eval mode (dropout = id)."""
    q_idx = jnp.concatenate([support_indices, query_indices], axis=1)     # (B, Q)
    B, Q = q_idx.shape
    # Embedding row gather is data-dependent indexing; kept as plain-JAX glue.
    query_items_embed = jnp.take(user_emb, q_idx, axis=0)                 # (B, Q, D)
    query_vecs = query_items_embed.reshape(-1, embed_dim)                 # (B*Q, D)
    item_t = prenormalize_items(item_emb)                                 # (D, N) bf16
    scores = cosine_relation_scores(query_vecs, item_t)                   # (B*Q, N) bf16
    batch_size = item_idx.shape[0]
    relation_scores = scores.reshape(batch_size, Q, item_emb.shape[0])
    return relation_scores, None


if __name__ == "__main__":
    # Small shapes consistent with the module.
    embed_dim = 32
    n_users = 64
    n_items = 200            # deliberately NOT a multiple of 128 (exercises edge blocks)
    batch = 2
    n_support = 4
    n_query = 4

    key = jax.random.PRNGKey(0)
    k_user, k_item, k_s, k_q = jax.random.split(key, 4)

    # Deterministic parameter init (mirrors torch xavier_uniform_ on embeddings).
    user_emb = xavier_uniform(k_user, (n_users, embed_dim))
    item_emb = xavier_uniform(k_item, (n_items, embed_dim))

    support_indices = jax.random.randint(k_s, (batch, n_support), 0, n_users)
    query_indices = jax.random.randint(k_q, (batch, n_query), 0, n_users)
    item_idx = jnp.arange(batch, dtype=jnp.int32)   # only its shape[0] is used

    relation_scores, _ = proto_net_base_forward(
        user_emb, item_emb, support_indices, query_indices, item_idx, embed_dim)
    relation_scores = jax.block_until_ready(relation_scores)

    # Pure-JAX f32 reference of the module math (bf16 kernel -> relaxed tolerance).
    q_idx = jnp.concatenate([support_indices, query_indices], axis=1)
    qv = jnp.take(user_emb, q_idx, axis=0).reshape(-1, embed_dim)
    qn = qv / jnp.maximum(jnp.linalg.norm(qv, axis=-1, keepdims=True), 1e-12)
    itn = item_emb / jnp.maximum(
        jnp.linalg.norm(item_emb, axis=-1, keepdims=True), 1e-12)
    ref = (qn @ itn.T).reshape(batch, n_support + n_query, n_items) * 10.0

    out_f32 = relation_scores.astype(jnp.float32)
    assert relation_scores.shape == (batch, n_support + n_query, n_items)
    assert relation_scores.dtype == jnp.bfloat16
    assert jnp.allclose(out_f32, ref, atol=1e-1, rtol=5e-2)

    print("KERNEL_OK")
</pallas_src>

<mosaic_0001>
module attributes {stable_mosaic.version = 11 : i64} {
  func.func @_cosine_score_kernel(%arg0: i32, %arg1: i32, %arg2: memref<16x32xbf16, #tpu.memory_space<vmem>>, %arg3: memref<32x256xbf16, #tpu.memory_space<vmem>>, %arg4: memref<16x256xbf16, #tpu.memory_space<vmem>>) attributes {dimension_semantics = [#tpu.dimension_semantics<parallel>, #tpu.dimension_semantics<parallel>], iteration_bounds = array<i64: 1, 1>, scalar_prefetch = 0 : i64, scratch_operands = 0 : i64, tpu.core_type = #tpu.core_type<tc>, window_params = [{transform_indices = @transform_0, window_bounds = array<i64: 16, 32>}, {transform_indices = @transform_1, window_bounds = array<i64: 32, 256>}, {transform_indices = @transform_2, window_bounds = array<i64: 16, 256>}]} {
    %c0 = arith.constant 0 : index
    %c0_0 = arith.constant 0 : index
    %0 = vector.load %arg2[%c0, %c0_0] : memref<16x32xbf16, #tpu.memory_space<vmem>>, vector<16x32xbf16>
    %1 = arith.extf %0 : vector<16x32xbf16> to vector<16x32xf32>
    %2 = arith.mulf %1, %1 : vector<16x32xf32>
    %cst = arith.constant dense<0.000000e+00> : vector<16xf32>
    %3 = vector.multi_reduction <add>, %2, %cst [1] : vector<16x32xf32> to vector<16xf32>
    %4 = vector.shape_cast %3 : vector<16xf32> to vector<16x1xf32>
    %cst_1 = arith.constant 1.000000e-24 : f32
    %5 = vector.broadcast %cst_1 : f32 to vector<16x1xf32>
    %6 = arith.maximumf %4, %5 : vector<16x1xf32>
    %7 = math.rsqrt %6 : vector<16x1xf32>
    %cst_2 = arith.constant 1.000000e+01 : f32
    %8 = vector.broadcast %cst_2 : f32 to vector<16x1xf32>
    %9 = arith.mulf %8, %7 : vector<16x1xf32>
    %10 = vector.broadcast %9 : vector<16x1xf32> to vector<16x32xf32>
    %11 = arith.mulf %1, %10 : vector<16x32xf32>
    %12 = arith.truncf %11 : vector<16x32xf32> to vector<16x32xbf16>
    %c0_3 = arith.constant 0 : index
    %c0_4 = arith.constant 0 : index
    %13 = vector.load %arg3[%c0_3, %c0_4] : memref<32x256xbf16, #tpu.memory_space<vmem>>, vector<32x256xbf16>
    %cst_5 = arith.constant dense<0.000000e+00> : vector<16x256xf32>
    %14 = tpu.matmul %12, %13, %cst_5 {dimension_numbers = #tpu.dot_dimension_numbers<[1], [0], [0], [1], [0, 0, 1, 1], [], []>} : vector<16x32xbf16>, vector<32x256xbf16>, vector<16x256xf32> -> vector<16x256xf32>
    %15 = arith.truncf %14 : vector<16x256xf32> to vector<16x256xbf16>
    %c0_6 = arith.constant 0 : index
    %c0_7 = arith.constant 0 : index
    %16 = vector.load %arg4[%c0_6, %c0_7] : memref<16x256xbf16, #tpu.memory_space<vmem>>, vector<16x256xbf16>
    tpu.vector_store %arg4[%c0_6, %c0_7], %15 {strides = array<i32>} : memref<16x256xbf16, #tpu.memory_space<vmem>>, vector<16x256xbf16>,
    return
  }
  func.func @transform_0(%arg0: i32, %arg1: i32) -> (i32, i32) {
    %c0_i32 = arith.constant 0 : i32
    %c0_i32_0 = arith.constant 0 : i32
    return %arg1, %c0_i32 : i32, i32
  }
  func.func @transform_1(%arg0: i32, %arg1: i32) -> (i32, i32) {
    %c0_i32 = arith.constant 0 : i32
    %c0_i32_0 = arith.constant 0 : i32
    return %c0_i32, %arg0 : i32, i32
  }
  func.func @transform_2(%arg0: i32, %arg1: i32) -> (i32, i32) {
    %c0_i32 = arith.constant 0 : i32
    return %arg1, %arg0 : i32, i32
  }
}

</mosaic_0001>

<bundles_post_ra>
// kernel: tpu_custom_call.1
= control target key start
LH: loop header
LB: loop body
LE: loop exit
PB: predicated region body
PF: predicated region fallthrough
CT: control target
= control target key end

     0   :  { %7 = vsyncpa [#allocation3], 0  ;;  %s336_s0 = inlined_call_operand.hbm [shape: bf16[16,32], index: 0, kind: input, shape index: {}]   ;;  %s337_s1 = inlined_call_operand.hbm [shape: bf16[32,200], index: 1, kind: input, shape index: {}]   ;;  %s338_s2 = inlined_call_operand.hbm [shape: bf16[16,200], index: 2, kind: output, shape index: {}]  }
   0x1   :  { %8 = vsyncpa [#allocation6], 0 }
   0x2   :  { %9 = vsyncpa [#allocation4], 0  ;;  %s268_s9 = smov [#allocation2]   ;;  %s196_s13 = scalar_lea.hbm %s336_s0, 128 }
   0x3   :  { %s15_s10 = sshll.u32 %s268_s9, 4  ;;  %p197_p0 = scmp.ne.s32.totalorder %s336_s0, %s196_s13  ;;  %s16_s10 = int_to_ptr.vmem [resolvable:$true] %s15_s10 }
   0x4   :  { %p200_p1 = scmp.lt.u32.totalorder %s196_s13, %s336_s0 }
   0x6   :  { %p202_p2 = pnand %p200_p1, %p197_p0 }
   0x8   :  { %205 = shalt.err (!%p202_p2)
}
   0x9   :  { %s206_s18 = scalar_lea.vmem %s16_s10, 128  ;;  %p211_p4 = scmp.lt.s32.totalorder %s16_s10, %s16_s10 }
   0xa   :  { %p207_p3 = scmp.ne.s32.totalorder %s16_s10, %s206_s18  ;;  %p212_p5 = scmp.lt.s32.totalorder %s206_s18, %s206_s18 }
   0xc   :  { %p213_p6 = por %p212_p5, %p211_p4 }
   0xe   :  { %p214_p7 = pnand %p213_p6, %p207_p3 }
  0x10   :  { %217 = shalt.err (!%p214_p7)
}
  0x11   :  { %s269_s19 = smov 64   ;;  %s270_s20 = smov 4  }
  0x12   :  { %21 = dma.hbm_to_vmem [thread:$0]  %s336_s0, 128, %s16_s10, [#allocation3], %s269_s19, %s269_s19, %s270_s20  }
  0x13   :  { %s271_s23 = smov [#allocation5]   ;;  %s218_s27 = scalar_lea.hbm %s337_s1, 512 }
  0x14   :  { %s27_s24 = sshll.u32 %s271_s23, 4  ;;  %p219_p8 = scmp.ne.s32.totalorder %s337_s1, %s218_s27  ;;  %s28_s24 = int_to_ptr.vmem [resolvable:$true] %s27_s24 }
  0x15   :  { %p222_p9 = scmp.lt.u32.totalorder %s218_s27, %s337_s1 }
  0x17   :  { %p224_p10 = pnand %p222_p9, %p219_p8 }
  0x19   :  { %227 = shalt.err (!%p224_p10)
}
  0x1a   :  { %s228_s4 = scalar_lea.vmem %s28_s24, 512  ;;  %p233_p12 = scmp.lt.s32.totalorder %s28_s24, %s28_s24 }
  0x1b   :  { %p229_p11 = scmp.ne.s32.totalorder %s28_s24, %s228_s4  ;;  %p234_p13 = scmp.lt.s32.totalorder %s228_s4, %s228_s4 }
  0x1d   :  { %p235_p0 = por %p234_p13, %p233_p12 }
  0x1f   :  { %p236_p1 = pnand %p235_p0, %p229_p11 }
  0x21   :  { %239 = shalt.err (!%p236_p1)
}
  0x22   :  { %s272_s0 = smov 128   ;;  %s273_s5 = smov 8  }
  0x23   :  { %33 = dma.hbm_to_vmem [thread:$0]  %s337_s1, 512, %s28_s24, [#allocation6], %s272_s0, %s272_s0, %s273_s5  }
  0x24   :  { %262 = dma.done.wait [#allocation3], 128  }
  0x25   :  { %263 = vsyncadd [#allocation3], 4294967168 }
  0x26   :  { %264 = dma.done.wait [#allocation6], 512  }
  0x27   :  { %265 = vsyncadd [#allocation6], 4294966784  ;;  %v175_v0 = vld [vmem:[#allocation2] sm:$0xff]   ;;  %vm47_vm0 = vcmask 261120   ;;  %v186_v7 = vld [vmem:[#allocation5 + $0x4] ss:$8 sps:$4 sm:$0xff]  }
  0x28   :  { %v176_v1 = vunpack.c.l.bf16 %v175_v0  ;;  %v177_v2 = vunpack.c.h.bf16 %v175_v0  ;;  %v188_v8 = vld [vmem:[#allocation5] ss:$8 sps:$4 sm:$0xff]   ;;  %90 = vmatprep.subr.bf16.mxu0 %v186_v7  ;;  %v189_v9 = vld [vmem:[#allocation5 + $0x14] ss:$8 sps:$4 sm:$0xff]   ;;  %v191_v10 = vld [vmem:[#allocation5 + $0x10] ss:$8 sps:$4 sm:$0xff]  }
  0x29   :  { %91 = vmatpush1.bf16.msra.mxu0 %v188_v8  ;;  %v274_v11 = vmov 0   ;;  %s275_s1 = smov [#allocation7]  }
  0x2a   :  { %v45_v3 = vmul.f32 %v176_v1, %v176_v1  ;;  %v46_v4 = vmul.f32 %v177_v2, %v177_v2  ;;  %92 = vmatprep.subr.bf16.mxu0 %v189_v9  ;;  %122 = vmatprep.mubr.bf16.mxu0 %v274_v11  ;;  %s152_s8 = sshll.u32 %s275_s1, 4  ;;  %s153_s8 = int_to_ptr.vmem [resolvable:$true] %s152_s8 }
  0x2b   :  { %s240_s9 = scalar_lea.vmem %s153_s8, 256  ;;  %p245_p3 = scmp.lt.s32.totalorder %s153_s8, %s153_s8 }
  0x2c   :  { %v48_v5 = vsel %vm47_vm0, %v45_v3, 0.0  ;;  %v51_v6 = vsel %vm47_vm0, %v46_v4, 0.0  ;;  %p241_p2 = scmp.ne.s32.totalorder %s153_s8, %s240_s9  ;;  %p246_p4 = scmp.lt.s32.totalorder %s240_s9, %s240_s9 }
  0x2d   :  { %49 = vadd.xlane.f32.xlu0 %v48_v5  ;;  %93 = vmatpush1.bf16.msra.mxu0 %v191_v10 }
  0x2e   :  { %p247_p5 = por %p246_p4, %p245_p3 }
  0x30   :  { %p248_p6 = pnand %p247_p5, %p241_p2 }
  0x31   :  { %52 = vadd.xlane.f32.xlu0 %v51_v6 }
  0xba   :  { %v50_v12 = vpop.xlane.xlu0 %49 }
  0xbb   :  { %v54_v13 = vmax.f32 %v50_v12, 1e-24 }
  0xbd   :  { %192 = vrsqrt.f32 %v54_v13 }
  0xbe   :  { %v53_v14 = vpop.xlane.xlu0 %52 }
  0xbf   :  { %v55_v15 = vmax.f32 %v53_v14, 1e-24 }
  0xc1   :  { %194 = vrsqrt.f32 %v55_v15 }
  0xc7   :  { %v193_v16 = vpop.eup %192 }
  0xc8   :  { %v58_v17 = vmul.f32 10.0, %v193_v16 }
  0xca   :  { %v60_v20 = vmul.f32 %v176_v1, %v58_v17 }
  0xcb   :  { %v195_v18 = vpop.eup %194 }
  0xcc   :  { %v59_v19 = vmul.f32 10.0, %v195_v18 }
  0xce   :  { %v61_v21 = vmul.f32 %v177_v2, %v59_v19 }
  0xd0   :  { %v62_v22 = vpack.c.bf16 %v61_v21, %v60_v20 }
  0xd2   :  { %169 = vmatmul.mubr.msk.bf16.vlgmr.msra.gmra.mrb[0].mxu0 %vm47_vm0, %v62_v22 }
 0x1a5   :  { %v124_v23 = vpop.f32.mrb[0].mxu0 }
 0x1a6   :  { %v126_v24 = vpop.f32.mrb[1].mxu0 }
 0x1a7   :  { %v172_v25 = vpack.c.bf16 %v126_v24, %v124_v23  ;;  %v128_v26 = vpop.f32.mrb[2].mxu0 }
 0x1a8   :  { %v130_v27 = vpop.f32.mrb[3].mxu0 }
 0x1a9   :  { %145 = vst [vmem:[#allocation7] sm:$0xff] %v172_v25  ;;  %v173_v28 = vpack.c.bf16 %v130_v27, %v128_v26 }
 0x1ab   :  { %146 = vst [vmem:[#allocation7 + $0x8] sm:$0xff] %v173_v28 }
 0x1ac   :  { %251 = shalt.err (!%p248_p6)
}
 0x1ad   :  { %s252_s12 = scalar_lea.hbm %s338_s2, 256 }
 0x1ae   :  { %p253_p7 = scmp.ne.s32.totalorder %s338_s2, %s252_s12  ;;  %p256_p8 = scmp.lt.u32.totalorder %s252_s12, %s338_s2 }
 0x1b0   :  { %p258_p9 = pnand %p256_p8, %p253_p7 }
 0x1b2   :  { %261 = shalt.err (!%p258_p9)
}
 0x1b3   :  { %158 = dma.vmem_to_hbm [thread:$0]  %s153_s8, 256, %s338_s2, [#allocation4], %s272_s0, %s272_s0, %s273_s5  }
 0x1b4   :  { %266 = dma.done.wait [#allocation4], 256  }
 0x1b5   :  { %267 = vsyncadd [#allocation4], 4294967040 }
 0x1b6   :  { %162 = vsyncpa [#allocation3], 1 }
 0x1b7   :  { %163 = vsyncpa [#allocation6], 1 }
 0x1b8   :  { %164 = vsyncpa [#allocation4], 1 }

</bundles_post_ra>
